<compile_context>
chip_gen: v7x
topology: tpu7x:2x2x1
jax: 0.10.0
libtpu: 0.0.40
codegen_flags: <defaults>
</compile_context>

<pallas_src>
import functools

import jax
import jax.numpy as jnp
from jax import lax
from jax.experimental import pallas as pl
from jax.experimental.pallas import tpu as pltpu


def _rmsnorm_kernel(x_ref, g_ref, o_ref, *, eps):
    x = x_ref[...].astype(jnp.float32)                # (tile_rows, dim)
    g = g_ref[...]                                    # (1, dim) f32, sqrt(dim) folded in
    sumsq = jnp.sum(x * x, axis=-1, keepdims=True)    # XLU row reduction
    # F.normalize: x / max(||x||, eps)  ==  x * rsqrt(max(sumsq, eps^2))
    inv = lax.rsqrt(jnp.maximum(sumsq, eps * eps))    # EUP
    o_ref[...] = (x * inv * g).astype(o_ref.dtype)


def _round_up(n, m):
    return ((n + m - 1) // m) * m


def _vmem_capacity_bytes():
    try:
        cap = getattr(pltpu.get_tpu_info(), "vmem_capacity_bytes", None)
        if cap:
            return int(cap)
    except Exception:
        pass
    return 64 << 20  # conservative default (v7x-sized)


def _choose_tile_rows(rows, dim, itemsize, sub, target_block_bytes):
    # Mem-bound kernel: big blocks amortize the ~0.35 us per-grid-step overhead.
    tr = target_block_bytes // max(dim * itemsize, 1)
    tr = min(tr, 4096)                      # row-tile cap
    tr = min(tr, _round_up(max(rows, 1), sub))
    tr = max(sub, (tr // sub) * sub)        # dtype-aware sublane multiple
    return tr


def rmsnorm(x, gamma=None, *, affine=True, eps=1e-12):
    """x: (..., dim). Returns l2norm(x, dim=-1) * gamma * sqrt(dim)."""
    orig_shape = x.shape
    dim = orig_shape[-1]
    scale = float(dim) ** 0.5

    rows = 1
    for s in orig_shape[:-1]:
        rows *= s
    x2d = x.reshape(rows, dim)

    # Keep gamma in float32; fold the sqrt(dim) scale in once (tiny array).
    if affine:
        g = gamma.reshape(dim).astype(jnp.float32) * scale
    else:
        g = jnp.full((dim,), scale, dtype=jnp.float32)
    g2d = g.reshape(1, dim)

    itemsize = jnp.dtype(x.dtype).itemsize
    sub = max(8, 32 // itemsize)            # f32 -> 8, bf16 -> 16, int8/fp8 -> 32

    vmem_cap = _vmem_capacity_bytes()
    target_block_bytes = (2 << 20) if vmem_cap <= (64 << 20) else (4 << 20)

    tile_rows = _choose_tile_rows(rows, dim, itemsize, sub, target_block_bytes)

    # v7x megacore: prefer an even number of grid blocks when rows allow
    # (no-op on single-TC v5e/v6e besides a tiny extra grid step).
    nb = pl.cdiv(rows, tile_rows)
    if nb % 2 == 1 and rows >= 2 * sub:
        cand = max(sub, _round_up(pl.cdiv(rows, nb + 1), sub))
        if pl.cdiv(rows, cand) % 2 == 0:
            tile_rows = cand
    grid = (pl.cdiv(rows, tile_rows),)

    # TODO(synk): for very large dim (a single (tile_rows, dim) f32 block no
    # longer fits VMEM even at tile_rows == sub), switch to a two-pass /
    # reduction-axis grid structure instead of shrinking row tiles further.

    # Explicit VMEM budget: double-buffered in + out tiles, f32 temporaries for
    # the upcast, resident gamma, plus slack; clamped per-generation.
    tile_in_bytes = tile_rows * dim * itemsize
    tile_f32_bytes = tile_rows * dim * 4
    need = 4 * tile_in_bytes + 4 * tile_f32_bytes + dim * 4 + (4 << 20)
    vmem_limit = int(min(max(need, 16 << 20), min((vmem_cap * 3) // 4, 96 << 20)))

    cost = pl.CostEstimate(
        flops=3 * rows * dim,
        transcendentals=rows,
        bytes_accessed=2 * rows * dim * itemsize + dim * 4,
    )

    kernel = functools.partial(_rmsnorm_kernel, eps=eps)

    out2d = pl.pallas_call(
        kernel,
        out_shape=jax.ShapeDtypeStruct((rows, dim), x.dtype),
        grid=grid,
        in_specs=[
            # Last block may be partial when rows % tile_rows != 0: garbage
            # tail rows are normalized independently and their writes dropped.
            pl.BlockSpec((tile_rows, dim), lambda i: (i, 0)),
            pl.BlockSpec((1, dim), lambda i: (0, 0)),  # constant index -> resident
        ],
        out_specs=pl.BlockSpec((tile_rows, dim), lambda i: (i, 0)),
        compiler_params=pltpu.CompilerParams(
            dimension_semantics=("parallel",),
            vmem_limit_bytes=vmem_limit,
        ),
        cost_estimate=cost,
    )(x2d, g2d)

    return out2d.reshape(orig_shape)


def rmsnorm_ref(x, gamma, *, affine=True, eps=1e-12):
    dim = x.shape[-1]
    scale = float(dim) ** 0.5
    xf = x.astype(jnp.float32)
    norm = jnp.sqrt(jnp.sum(xf * xf, axis=-1, keepdims=True))
    out = xf / jnp.maximum(norm, eps)
    g = gamma.astype(jnp.float32) if affine else 1.0
    return (out * g * scale).astype(x.dtype)


if __name__ == "__main__":
    key = jax.random.PRNGKey(0)

    # Shape implied by the module: (..., dim) with learnable gamma of size dim.
    batch, seq, hidden = 2, 8, 32
    x = jax.random.normal(key, (batch, seq, hidden), dtype=jnp.float32)
    gamma = jnp.ones((hidden,), dtype=jnp.float32)  # nn.Parameter(torch.ones(dim))

    out = jax.block_until_ready(rmsnorm(x, gamma))
    ref = rmsnorm_ref(x, gamma)
    assert out.shape == x.shape
    assert jnp.allclose(out, ref, atol=1e-5, rtol=1e-5), "mismatch vs reference"

    # Exercise the remainder paths: rows not a multiple of the row tile and a
    # dim that is not a multiple of 128 (handled with a full-dim block + a
    # partial last row block instead of HBM padding).
    x2 = jax.random.normal(jax.random.PRNGKey(1), (3, 5, 48), dtype=jnp.float32)
    g2 = jax.random.normal(jax.random.PRNGKey(2), (48,), dtype=jnp.float32)
    out2 = jax.block_until_ready(rmsnorm(x2, g2))
    ref2 = rmsnorm_ref(x2, g2)
    assert out2.shape == x2.shape
    assert jnp.allclose(out2, ref2, atol=1e-5, rtol=1e-5), "mismatch (unaligned case)"

    print("KERNEL_OK")
</pallas_src>

<mosaic_0001>
module attributes {stable_mosaic.version = 11 : i64} {
  func.func @_rmsnorm_kernel(%arg0: i32, %arg1: memref<8x32xf32, #tpu.memory_space<vmem>>, %arg2: memref<1x32xf32, #tpu.memory_space<vmem>>, %arg3: memref<8x32xf32, #tpu.memory_space<vmem>>) attributes {dimension_semantics = [#tpu.dimension_semantics<parallel>], iteration_bounds = array<i64: 2>, scalar_prefetch = 0 : i64, scratch_operands = 0 : i64, tpu.core_type = #tpu.core_type<tc>, window_params = [{transform_indices = @transform_0, window_bounds = array<i64: 8, 32>}, {pipeline_mode = #tpu.pipeline_mode<synchronous>, transform_indices = @transform_1, window_bounds = array<i64: 1, 32>}, {transform_indices = @transform_2, window_bounds = array<i64: 8, 32>}]} {
    %c0 = arith.constant 0 : index
    %c0_0 = arith.constant 0 : index
    %0 = vector.load %arg1[%c0, %c0_0] : memref<8x32xf32, #tpu.memory_space<vmem>>, vector<8x32xf32>
    %c0_1 = arith.constant 0 : index
    %c0_2 = arith.constant 0 : index
    %1 = vector.load %arg2[%c0_1, %c0_2] : memref<1x32xf32, #tpu.memory_space<vmem>>, vector<1x32xf32>
    %2 = arith.mulf %0, %0 : vector<8x32xf32>
    %cst = arith.constant dense<0.000000e+00> : vector<8xf32>
    %3 = vector.multi_reduction <add>, %2, %cst [1] : vector<8x32xf32> to vector<8xf32>
    %4 = vector.shape_cast %3 : vector<8xf32> to vector<8x1xf32>
    %cst_3 = arith.constant 1.000000e-24 : f32
    %5 = vector.broadcast %cst_3 : f32 to vector<8x1xf32>
    %6 = arith.maximumf %4, %5 : vector<8x1xf32>
    %7 = math.rsqrt %6 : vector<8x1xf32>
    %8 = vector.broadcast %7 : vector<8x1xf32> to vector<8x32xf32>
    %9 = arith.mulf %0, %8 : vector<8x32xf32>
    %10 = vector.broadcast %1 : vector<1x32xf32> to vector<8x32xf32>
    %11 = arith.mulf %9, %10 : vector<8x32xf32>
    %c0_4 = arith.constant 0 : index
    %c0_5 = arith.constant 0 : index
    %12 = vector.load %arg3[%c0_4, %c0_5] : memref<8x32xf32, #tpu.memory_space<vmem>>, vector<8x32xf32>
    tpu.vector_store %arg3[%c0_4, %c0_5], %11 {strides = array<i32>} : memref<8x32xf32, #tpu.memory_space<vmem>>, vector<8x32xf32>,
    return
  }
  func.func @transform_0(%arg0: i32) -> (i32, i32) {
    %c0_i32 = arith.constant 0 : i32
    %c0_i32_0 = arith.constant 0 : i32
    return %arg0, %c0_i32 : i32, i32
  }
  func.func @transform_1(%arg0: i32) -> (i32, i32) {
    %c0_i32 = arith.constant 0 : i32
    %c0_i32_0 = arith.constant 0 : i32
    %c0_i32_1 = arith.constant 0 : i32
    return %c0_i32, %c0_i32_0 : i32, i32
  }
  func.func @transform_2(%arg0: i32) -> (i32, i32) {
    %c0_i32 = arith.constant 0 : i32
    %c0_i32_0 = arith.constant 0 : i32
    return %arg0, %c0_i32 : i32, i32
  }
}

</mosaic_0001>

<bundles_post_ra>
// kernel: tpu_custom_call.1
= control target key start
LH: loop header
LB: loop body
LE: loop exit
PB: predicated region body
PF: predicated region fallthrough
CT: control target
= control target key end

     0   :  { %7 = vsyncpa [#allocation3], 0  ;;  %s603_s0 = inlined_call_operand.hbm [shape: f32[16,32], index: 0, kind: input, shape index: {}]   ;;  %s604_s1 = inlined_call_operand.vmem [shape: f32[1,32], index: 1, kind: input, shape index: {}]   ;;  %s605_s2 = inlined_call_operand.hbm [shape: f32[16,32], index: 2, kind: output, shape index: {}]  }
   0x1   :  { %9 = vsyncpa [#allocation3 + $0x1], 0 }
   0x2   :  { %10 = vsyncpa [#allocation4], 0 }
   0x3   :  { %12 = vsyncpa [#allocation4 + $0x1], 0  ;;  %s437_s9 = smov 0   ;;  %s439_s10 = smov 0  }
   0x4   :  { %s441_s11 = smov 0   ;;  %s443_s12 = smov 0  }
   0x5 LB: > { %s458_s13 = sadd.s32 4294967295, %s418_s12   ;;  %s261_s14 = sadd.s32 4294967294, %s418_s12   ;;  %s418_s12 = sphi %s443_s12, %s620_s12   ;;  %s414_s11 = sphi %s441_s11, %s619_s11   ;;  %s410_s10 = sphi %s439_s10, %s618_s10   ;;  %s406_s9 = sphi %s437_s9, %s617_s9  }
   0x6   : > { %s462_s15 = sadd.s32 1, %s418_s12   ;;  %s25_s16 = sadd.s32 1, %s414_s11 }
   0x7   : > { %s22_s17 = ssub.s32 %s418_s12, %s462_s15  ;;  %p32_p0 = scmp.ne.s32.totalorder %s414_s11, %s410_s10 }
   0x8   : > { %p23_p1 = scmp.eq.s32.totalorder %s22_s17, 0  ;;  %p33_p2 = scmp.eq.s32.totalorder %s418_s12, 0 }
   0x9   : > { %p38_p3 = scmp.ne.s32.totalorder %s410_s10, %s406_s9  ;;  %p39_p4 = scmp.eq.s32.totalorder %s458_s13, 0 }
   0xa   : > { %s474_s18 = scalar_select %p23_p1, %s414_s11, %s25_s16  }
   0xb   : > { %p476_p5 = por %p33_p2, %p32_p0  ;;  %p480_p6 = por %p39_p4, %p38_p3 }
   0xc   : > { %p83_p7 = scmp.eq.s32.totalorder %s458_s13, 1  ;;  %p89_p8 = scmp.eq.s32.totalorder %s261_s14, 1 }
   0xd   : > { %p286_p10 = scmp.lt.s32.totalorder %s418_s12, 2  ;;  %s112_s23 = sand.u32 1, %s414_s11  }
   0xe   : > { %p487_p11 = por %p83_p7, %p32_p0  ;;  %p491_p12 = por %p89_p8, %p38_p3 }
   0xf   : > { %s265_s24 = sshll.u32 %s418_s12, 7  ;;  %s264_s25 = sshll.u32 %s112_s23, 3 }
  0x10   : > { %s609_s21 = scalar_select %p487_p11, 1, 0 }
  0x11   : > { %s610_s22 = scalar_select %p491_p12, 1, 0 }
  0x12   : > { %s500_s28 = scalar_lea.hbm %s603_s0, %s265_s24  ;;  %s116_s29 = scalar_lea.vmem [#allocation2], %s264_s25 }
  0x13   : > { %s123_s30 = sshll.u32 %s116_s29, 4  ;;  %p504_p13 = pnand %p286_p10, %p476_p5  ;;  %s508_s30 = int_to_ptr.vmem [resolvable:$true] %s123_s30 }
  0x14   : > { %s113_s4 = scalar_lea.sflag [#allocation3], %s112_s23  ;;  %s322_s5 = scalar_lea.hbm %s500_s28, 128 }
  0x15   : > { %p323_p2 = scmp.ne.s32.totalorder %s500_s28, %s322_s5  ;;  %p324_p3 = pneg %p504_p13 }
  0x16   : > { %s327_s8 = scalar_lea.hbm %s603_s0, 256  ;;  %p328_p5 = scmp.lt.u32.totalorder %s500_s28, %s603_s0 }
  0x17   : > { %p325_p4 = pnand %p324_p3, %p323_p2  ;;  %p329_p8 = scmp.lt.u32.totalorder %s327_s8, %s322_s5 }
  0x18   : > { %p331_p9 = scmp.lt.u32.totalorder %s322_s5, %s500_s28 }
  0x19   : > { %p326_p7 = pneg %p325_p4  ;;  %p330_p10 = por %p329_p8, %p328_p5 }
  0x1b   : > { %p332_p0 = por %p331_p9, %p330_p10 }
  0x1d   : > { %p333_p1 = pnand %p332_p0, %p326_p7 }
  0x1f   : > { %336 = shalt.err (!%p333_p1)
}
  0x20   : > { %s337_s17 = scalar_lea.vmem %s508_s30, 128  ;;  %s420_s19 = smov [#allocation2]  }
  0x21   : > { %p338_p2 = scmp.ne.s32.totalorder %s508_s30, %s337_s17  ;;  %s342_s23 = sshll.u32 %s420_s19, 4  ;;  %s343_s23 = int_to_ptr.vmem [resolvable:$false] %s342_s23 }
  0x22   : > { %s344_s24 = scalar_lea.vmem %s343_s23, 256  ;;  %p345_p11 = scmp.lt.s32.totalorder %s508_s30, %s343_s23 }
  0x23   : > { %p340_p4 = pnand %p338_p2, %p324_p3  ;;  %p346_p5 = scmp.lt.s32.totalorder %s344_s24, %s337_s17 }
  0x25   : > { %p341_p12 = pneg %p340_p4  ;;  %p347_p8 = por %p346_p5, %p345_p11 }
  0x27   : > { %p348_p9 = pnand %p347_p8, %p341_p12 }
  0x29   : > { %351 = shalt.err (!%p348_p9)
}
  0x2a   : > { %281 = dma.hbm_to_vmem [thread:$0]  (!%p504_p13), %s500_s28, 128, %s508_s30, %s113_s4  }
  0x2b   : > { %p612_p0 = scmp.lt.s32.totalorder %s418_s12, 3  ;;  %p613_p1 = scmp.ge.s32.totalorder %s418_s12, 1 }
  0x2d   : > { %p129_p3 = pnand %p613_p1, %p612_p0 }
  0x2e   : > { %s542_s25 = sand.u32 (!%p129_p3), 1, %s410_s10  }
  0x2f   : > { %132 = sbr.rel (%p129_p3) target bundleno = 232 (0xe8), region = 28  ;;  %s267_s26 = sshll.u32 (!%p129_p3), %s542_s25, 3 }
  0x30   : > { %s135_s27 = scalar_lea.sflag (!%p129_p3), [#allocation3], %s542_s25  ;;  %s138_s29 = scalar_lea.vmem (!%p129_p3), [#allocation2], %s267_s26 }
  0x36   : > { %397 = dma.done.wait (%p480_p6), %s135_s27, 128  }
  0x37   : > { %399 = vsyncadd (%p480_p6), %s135_s27, 4294967168  ;;  %v159_v0 = vld [vmem:[%s138_s29] sm:$0xff]  ;;  %vm162_vm0 = vcmask 261120   ;;  %s271_s3 = sshll.u32 %s458_s13, 7  ;;  %s158_s20 = scalar_lea.vmem [#allocation5], %s267_s26 }
  0x38   : > { %v161_v1 = vmul.f32 %v159_v0, %v159_v0  ;;  %v269_v6 = vld [vmem:[%s604_s1] ss:$0 sm:$0xff]  ;;  %s191_s4 = sshll.u32 %s158_s20, 4  ;;  %s558_s7 = scalar_lea.hbm %s605_s2, %s271_s3  ;;  %s560_s4 = int_to_ptr.vmem [resolvable:$true] %s191_s4 }
  0x39   : > { %s178_s8 = scalar_lea.sflag [#allocation4], %s542_s25  ;;  %s352_s14 = scalar_lea.vmem %s560_s4, 128 }
  0x3a   : > { %v163_v2 = vsel %vm162_vm0, %v161_v1, 0.0  ;;  %p353_p6 = scmp.ne.s32.totalorder %s560_s4, %s352_s14  ;;  %p614_p11 = scmp.ne.s32.totalorder %s609_s21, 0 }
  0x3b   : > { %164 = vadd.xlane.f32.xlu0 %v163_v2  ;;  %s421_s13 = smov [#allocation5]  }
  0x3c   : > { %p354_p12 = pnand %p353_p6, %p614_p11  ;;  %s356_s16 = sshll.u32 %s421_s13, 4  ;;  %s357_s16 = int_to_ptr.vmem [resolvable:$false] %s356_s16 }
  0x3d   : > { %s358_s17 = scalar_lea.vmem %s357_s16, 256  ;;  %p359_p7 = scmp.lt.s32.totalorder %s560_s4, %s357_s16 }
  0x3e   : > { %p355_p13 = pneg %p354_p12  ;;  %p360_p10 = scmp.lt.s32.totalorder %s358_s17, %s352_s14 }
  0x40   : > { %p361_p2 = por %p360_p10, %p359_p7 }
  0x42   : > { %p362_p4 = pnand %p361_p2, %p355_p13 }
  0xc8   : > { %v165_v3 = vpop.xlane.xlu0 %164 }
  0xc9   : > { %v166_v4 = vmax.f32 %v165_v3, 1e-24 }
  0xcb   : > { %320 = vrsqrt.f32 %v166_v4 }
  0xd5   : > { %v321_v5 = vpop.eup %320 }
  0xd6   : > { %v168_v7 = vmul.f32 %v321_v5, %v159_v0 }
  0xd8   : > { %v175_v8 = vmul.f32 %v269_v6, %v168_v7 }
  0xda   : > { %176 = vst.msk [vmem:[%s158_s20] sm:$0xff] %vm162_vm0, %v175_v8 }
  0xdb   : > { %365 = shalt.err (!%p362_p4)
}
  0xdc   : > { %s366_s19 = scalar_lea.hbm %s558_s7, 128  ;;  %s370_s25 = scalar_lea.hbm %s605_s2, 256 }
  0xdd   : > { %p367_p5 = scmp.ne.s32.totalorder %s558_s7, %s366_s19  ;;  %p371_p0 = scmp.lt.u32.totalorder %s558_s7, %s605_s2 }
  0xde   : > { %p372_p1 = scmp.lt.u32.totalorder %s370_s25, %s366_s19  ;;  %p374_p6 = scmp.lt.u32.totalorder %s366_s19, %s558_s7 }
  0xdf   : > { %p368_p8 = pnand %p367_p5, %p614_p11 }
  0xe0   : > { %p373_p3 = por %p372_p1, %p371_p0 }
  0xe1   : > { %p369_p9 = pneg %p368_p8 }
  0xe2   : > { %p375_p12 = por %p374_p6, %p373_p3 }
  0xe4   : > { %p376_p13 = pnand %p375_p12, %p369_p9 }
  0xe6   : > { %379 = shalt.err (!%p376_p13)
}
  0xe7   : > { %276 = dma.vmem_to_hbm [thread:$0]  (%p614_p11), %s560_s4, 128, %s558_s7, %s178_s8  }
  0xe8 PF: > { %s203_s29 = sand.u32 1, %s406_s9   ;;  %p615_p7 = scmp.ne.s32.totalorder %s610_s22, 0 }
  0xe9   : > { %p616_p10 = scmp.ge.s32.totalorder %s418_s12, 2  ;;  %s204_s28 = scalar_lea.sflag [#allocation4], %s203_s29 }
  0xeb   : > { %p283_p2 = pnand %p616_p10, %p615_p7 }
  0xed   : > { %401 = dma.done.wait (!%p283_p2), %s204_s28, 128  }
  0xee   : > { %403 = vsyncadd (!%p283_p2), %s204_s28, 4294967168  ;;  %p15_p4 = scmp.ge.s32.totalorder %s462_s15, 4   ;;  %s617_s9 = smov %s410_s10 }
  0xef   : > { %s618_s10 = smov %s414_s11  ;;  %s619_s11 = smov %s474_s18 }
  0xf0   : > { %s620_s12 = smov %s462_s15  ;;  %17 = sbr.rel (!%p15_p4) target bundleno = 5 (0x5), region = 73 }
  0xf7   :  { %209 = vsyncpa [#allocation3], 1 }
  0xf8   :  { %211 = vsyncpa [#allocation3 + $0x1], 1 }
  0xf9   :  { %212 = vsyncpa [#allocation4], 1 }
  0xfa   :  { %214 = vsyncpa [#allocation4 + $0x1], 1 }

</bundles_post_ra>
